<compile_context>
chip_gen: v5e
topology: v5e:2x2
jax: 0.10.0
libtpu: 0.0.40
codegen_flags: <defaults>
</compile_context>

<pallas_src>
import functools
from typing import List

import jax
import jax.numpy as jnp
from jax.experimental import pallas as pl
from jax.experimental.pallas import tpu as pltpu

BN_EPS = 1e-5
LEAKY_SLOPE = 0.01   # nn.LeakyReLU default negative_slope
LANE = 128


def _round_up(x: int, m: int) -> int:
    return ((x + m - 1) // m) * m


def _vmem_capacity_bytes() -> int:
    """Physical VMEM of the attached TPU; conservative fallback = v7x 64 MiB."""
    try:
        return int(pltpu.get_tpu_info().vmem_capacity_bytes)
    except Exception:
        return 64 << 20


def _apply_act(y, act: str):
    if act == "leaky_relu":
        # Valid because 0 < slope < 1: max(y, slope*y) == LeakyReLU(y).
        return jnp.maximum(y, LEAKY_SLOPE * y)
    if act == "tanh":
        return jnp.tanh(y)
    if act == "identity":
        return y
    raise ValueError(f"unknown activation {act!r}")


def _fused_encoder_kernel(*refs, activations, d_outs):
    """refs = (x_ref, w_ref_0..w_ref_{n-1}, gb_ref, o_ref).

    Per layer: y = x @ W (bf16 MXU operands, f32 accumulation); BatchNorm1d
    training-mode batch statistics (biased variance, one-pass sums); activation.
    Only the final activation is stored; everything else stays in vregs/VMEM.
    """
    n_layers = len(activations)
    x_ref = refs[0]
    w_refs = refs[1:1 + n_layers]
    gb_ref = refs[1 + n_layers]           # (2*n_layers, Dmax): rows 2i/2i+1 = gamma/beta
    o_ref = refs[2 + n_layers]

    gb = gb_ref[...]                      # single small f32 load
    h = x_ref[...]                        # (B, D0) f32
    inv_b = jnp.float32(1.0 / h.shape[0])

    for i in range(n_layers):
        d = d_outs[i]
        # bf16 operands on the MXU, f32 accumulation.
        y = jnp.dot(h.astype(jnp.bfloat16), w_refs[i][...],
                    preferred_element_type=jnp.float32)       # (B, d) f32
        # One-pass BN stats: two independent reductions, no serial chain.
        s1 = jnp.sum(y, axis=0, keepdims=True)                # (1, d)
        s2 = jnp.sum(y * y, axis=0, keepdims=True)            # (1, d)
        mean = s1 * inv_b
        var = jnp.maximum(s2 * inv_b - mean * mean, 0.0)      # biased variance
        gamma = gb[2 * i:2 * i + 1, :d]                       # (1, d)
        beta = gb[2 * i + 1:2 * i + 2, :d]                    # (1, d)
        scale = gamma * jax.lax.rsqrt(var + BN_EPS)           # fold gamma into scale
        y_hat = (y - mean) * scale + beta
        h = _apply_act(y_hat, activations[i])

    o_ref[...] = h.astype(o_ref.dtype)


def fused_encoder(x_flat, params, activations):
    """x_flat: (B, D0_pad) f32; params: [(w_t bf16 (Din_pad, Dout_pad),
    gamma (1, Dout_pad) f32, beta (1, Dout_pad) f32)]; -> (B, Dlast_pad) f32."""
    B, D0 = x_flat.shape
    n_layers = len(params)
    d_outs = tuple(w.shape[1] for (w, _, _) in params)
    d_max = max(d_outs)
    D_last = d_outs[-1]

    # Pack every layer's (gamma, beta) rows into ONE (2*n_layers, d_max) array
    # -> one tiny DMA instead of 2*n_layers separate (1,128) descriptors.
    gb_rows = []
    for (w, g, b) in params:
        pad = d_max - w.shape[1]
        gb_rows.append(jnp.pad(g, ((0, 0), (0, pad))))
        gb_rows.append(jnp.pad(b, ((0, 0), (0, pad))))
    gb = jnp.concatenate(gb_rows, axis=0).astype(jnp.float32)

    weights = [w for (w, _, _) in params]
    inputs = [x_flat] + weights + [gb]
    in_specs = ([pl.BlockSpec((B, D0), lambda: (0, 0))]
                + [pl.BlockSpec(w.shape, lambda: (0, 0)) for w in weights]
                + [pl.BlockSpec(gb.shape, lambda: (0, 0))])

    # Cost / footprint accounting.
    flops = 0
    transcendentals = 0
    bytes_accessed = x_flat.size * x_flat.dtype.itemsize
    footprint = x_flat.size * x_flat.dtype.itemsize
    d_in = D0
    for w, act, d_out in zip(weights, activations, d_outs):
        flops += 2 * B * d_in * d_out
        if act == "tanh":
            transcendentals += B * d_out
        w_bytes = w.size * w.dtype.itemsize
        bytes_accessed += w_bytes
        footprint += w_bytes + B * d_out * 4       # + f32 activation
        d_in = d_out
    gb_bytes = gb.size * gb.dtype.itemsize
    out_bytes = B * D_last * 4
    bytes_accessed += gb_bytes + out_bytes
    footprint += gb_bytes + out_bytes

    # Double-buffered operands + headroom, clamped below the physical VMEM of
    # the current generation (v7x = 64 MiB; v5e/v6e = 128 MiB).
    vmem_cap = _vmem_capacity_bytes()
    vmem_limit = min(max(2 * footprint + (4 << 20), 8 << 20),
                     max(vmem_cap - (8 << 20), 8 << 20))

    kernel = functools.partial(_fused_encoder_kernel,
                               activations=tuple(activations),
                               d_outs=d_outs)

    return pl.pallas_call(
        kernel,
        out_shape=jax.ShapeDtypeStruct((B, D_last), jnp.float32),
        in_specs=in_specs,
        out_specs=pl.BlockSpec((B, D_last), lambda: (0, 0)),
        compiler_params=pltpu.CompilerParams(vmem_limit_bytes=vmem_limit),
        cost_estimate=pl.CostEstimate(flops=flops,
                                      transcendentals=transcendentals,
                                      bytes_accessed=bytes_accessed),
    )(*inputs)


def init_params(key, in_dim: int, layers: List[int]):
    """Synthetic init matching the module's parameter shapes, padded to
    lane-aligned (multiple-of-128) feature dims. Padding rows/cols are zero so
    padded features stay exactly zero and never leak into real features."""
    dims = [in_dim] + list(layers)
    params = []
    for i, (d_in, d_out) in enumerate(zip(dims, dims[1:])):
        k = jax.random.fold_in(key, i)
        d_in_p, d_out_p = _round_up(d_in, LANE), _round_up(d_out, LANE)
        # nn.Linear weight is (out, in); we store its transpose (in, out).
        bound = 1.0 / (d_in ** 0.5)
        w_t = jax.random.uniform(k, (d_in, d_out), jnp.float32, -bound, bound)
        w_t = jnp.pad(w_t, ((0, d_in_p - d_in), (0, d_out_p - d_out)))
        w_t = w_t.astype(jnp.bfloat16)                     # bf16 MXU operand
        gamma = jnp.ones((1, d_out_p), jnp.float32)        # BN default weight
        beta = jnp.zeros((1, d_out_p), jnp.float32)        # BN default bias
        params.append((w_t, gamma, beta))
    return params


def base_encoder_forward(x, params, out_dim: int,
                         latent_space_function: str = "tanh"):
    # nn.Flatten(): (B, C, H, W) -> (B, C*H*W), row-major.
    B = x.shape[0]
    # BatchNorm1d batch statistics are taken over the rows actually in the
    # block: the batch must never be zero-padded (feature padding is fine).
    assert B >= 2, "BatchNorm1d training-mode stats need batch >= 2"
    h = x.reshape(B, -1).astype(jnp.float32)
    d0, d0_pad = h.shape[1], params[0][0].shape[0]
    if d0_pad != d0:
        h = jnp.pad(h, ((0, 0), (0, d0_pad - d0)))
    n_layers = len(params)
    activations = ["leaky_relu"] * (n_layers - 1) + [latent_space_function]
    out_padded = fused_encoder(h, params, activations)
    return out_padded[:, :out_dim]


if __name__ == "__main__":
    key = jax.random.PRNGKey(0)
    kx, kp = jax.random.split(key)

    # Small shapes: batch=8 (one full f32 sublane tile), channels=4, 16x16
    # spatial -> in_dim = 1024 (lane-aligned); encoder widths [128, 64, 32].
    B, C, H, W = 8, 4, 16, 16
    in_dim = C * H * W
    layers = [128, 64, 32]

    x = jax.random.normal(kx, (B, C, H, W), jnp.float32)
    params = init_params(kp, in_dim, layers)

    out = base_encoder_forward(x, params, layers[-1],
                               latent_space_function="tanh")
    out = jax.block_until_ready(out)

    assert out.shape == (B, layers[-1]), out.shape
    assert bool(jnp.all(jnp.isfinite(out)))

    # Pure-JAX reference of the same math (same padded bf16 weights; standard
    # two-pass BN stats to cross-check the kernel's one-pass formulation).
    h = x.reshape(B, -1).astype(jnp.float32)
    for i, (w_t, gamma, beta) in enumerate(params):
        y = jnp.dot(h.astype(jnp.bfloat16), w_t,
                    preferred_element_type=jnp.float32)
        mean = jnp.mean(y, axis=0, keepdims=True)
        var = jnp.mean((y - mean) ** 2, axis=0, keepdims=True)
        y = (y - mean) * jax.lax.rsqrt(var + BN_EPS) * gamma + beta
        if i == len(params) - 1:
            h = jnp.tanh(y)
        else:
            h = jnp.where(y >= 0, y, LEAKY_SLOPE * y)
    ref = h[:, :layers[-1]]
    assert bool(jnp.allclose(out, ref, atol=1e-3, rtol=1e-3)), (
        float(jnp.max(jnp.abs(out - ref))))

    print("KERNEL_OK")
</pallas_src>

<mosaic_0001>
module attributes {stable_mosaic.version = 11 : i64} {
  func.func @_fused_encoder_kernel(%arg0: memref<8x1024xf32, #tpu.memory_space<vmem>>, %arg1: memref<1024x128xbf16, #tpu.memory_space<vmem>>, %arg2: memref<128x128xbf16, #tpu.memory_space<vmem>>, %arg3: memref<128x128xbf16, #tpu.memory_space<vmem>>, %arg4: memref<6x128xf32, #tpu.memory_space<vmem>>, %arg5: memref<8x128xf32, #tpu.memory_space<vmem>>) attributes {dimension_semantics = [], scalar_prefetch = 0 : i64, scratch_operands = 0 : i64, tpu.core_type = #tpu.core_type<tc>} {
    %c0 = arith.constant 0 : index
    %c0_0 = arith.constant 0 : index
    %0 = vector.load %arg4[%c0, %c0_0] : memref<6x128xf32, #tpu.memory_space<vmem>>, vector<6x128xf32>
    %c0_1 = arith.constant 0 : index
    %c0_2 = arith.constant 0 : index
    %1 = vector.load %arg0[%c0_1, %c0_2] : memref<8x1024xf32, #tpu.memory_space<vmem>>, vector<8x1024xf32>
    %2 = arith.truncf %1 : vector<8x1024xf32> to vector<8x1024xbf16>
    %c0_3 = arith.constant 0 : index
    %c0_4 = arith.constant 0 : index
    %3 = vector.load %arg1[%c0_3, %c0_4] : memref<1024x128xbf16, #tpu.memory_space<vmem>>, vector<1024x128xbf16>
    %cst = arith.constant dense<0.000000e+00> : vector<8x128xf32>
    %4 = tpu.matmul %2, %3, %cst {dimension_numbers = #tpu.dot_dimension_numbers<[1], [0], [0], [1], [0, 0, 1, 1], [], []>} : vector<8x1024xbf16>, vector<1024x128xbf16>, vector<8x128xf32> -> vector<8x128xf32>
    %cst_5 = arith.constant dense<0.000000e+00> : vector<128xf32>
    %5 = vector.multi_reduction <add>, %4, %cst_5 [0] : vector<8x128xf32> to vector<128xf32>
    %6 = vector.shape_cast %5 : vector<128xf32> to vector<1x128xf32>
    %7 = arith.mulf %4, %4 : vector<8x128xf32>
    %cst_6 = arith.constant dense<0.000000e+00> : vector<128xf32>
    %8 = vector.multi_reduction <add>, %7, %cst_6 [0] : vector<8x128xf32> to vector<128xf32>
    %9 = vector.shape_cast %8 : vector<128xf32> to vector<1x128xf32>
    %cst_7 = arith.constant 1.250000e-01 : f32
    %10 = vector.broadcast %cst_7 : f32 to vector<1x128xf32>
    %11 = arith.mulf %6, %10 : vector<1x128xf32>
    %cst_8 = arith.constant 1.250000e-01 : f32
    %12 = vector.broadcast %cst_8 : f32 to vector<1x128xf32>
    %13 = arith.mulf %9, %12 : vector<1x128xf32>
    %14 = arith.mulf %11, %11 : vector<1x128xf32>
    %15 = arith.subf %13, %14 : vector<1x128xf32>
    %cst_9 = arith.constant 0.000000e+00 : f32
    %16 = vector.broadcast %cst_9 : f32 to vector<1x128xf32>
    %17 = arith.maximumf %15, %16 : vector<1x128xf32>
    %18 = vector.extract_strided_slice %0 {offsets = [0, 0], sizes = [1, 128], strides = [1, 1]} : vector<6x128xf32> to vector<1x128xf32>
    %19 = vector.extract_strided_slice %0 {offsets = [1, 0], sizes = [1, 128], strides = [1, 1]} : vector<6x128xf32> to vector<1x128xf32>
    %cst_10 = arith.constant 9.99999974E-6 : f32
    %20 = vector.broadcast %cst_10 : f32 to vector<1x128xf32>
    %21 = arith.addf %17, %20 : vector<1x128xf32>
    %22 = math.rsqrt %21 : vector<1x128xf32>
    %23 = arith.mulf %18, %22 : vector<1x128xf32>
    %24 = vector.broadcast %11 : vector<1x128xf32> to vector<8x128xf32>
    %25 = arith.subf %4, %24 : vector<8x128xf32>
    %26 = vector.broadcast %23 : vector<1x128xf32> to vector<8x128xf32>
    %27 = arith.mulf %25, %26 : vector<8x128xf32>
    %28 = vector.broadcast %19 : vector<1x128xf32> to vector<8x128xf32>
    %29 = arith.addf %27, %28 : vector<8x128xf32>
    %cst_11 = arith.constant 0.00999999977 : f32
    %30 = vector.broadcast %cst_11 : f32 to vector<8x128xf32>
    %31 = arith.mulf %30, %29 : vector<8x128xf32>
    %32 = arith.maximumf %29, %31 : vector<8x128xf32>
    %33 = arith.truncf %32 : vector<8x128xf32> to vector<8x128xbf16>
    %c0_12 = arith.constant 0 : index
    %c0_13 = arith.constant 0 : index
    %34 = vector.load %arg2[%c0_12, %c0_13] : memref<128x128xbf16, #tpu.memory_space<vmem>>, vector<128x128xbf16>
    %cst_14 = arith.constant dense<0.000000e+00> : vector<8x128xf32>
    %35 = tpu.matmul %33, %34, %cst_14 {dimension_numbers = #tpu.dot_dimension_numbers<[1], [0], [0], [1], [0, 0, 1, 1], [], []>} : vector<8x128xbf16>, vector<128x128xbf16>, vector<8x128xf32> -> vector<8x128xf32>
    %cst_15 = arith.constant dense<0.000000e+00> : vector<128xf32>
    %36 = vector.multi_reduction <add>, %35, %cst_15 [0] : vector<8x128xf32> to vector<128xf32>
    %37 = vector.shape_cast %36 : vector<128xf32> to vector<1x128xf32>
    %38 = arith.mulf %35, %35 : vector<8x128xf32>
    %cst_16 = arith.constant dense<0.000000e+00> : vector<128xf32>
    %39 = vector.multi_reduction <add>, %38, %cst_16 [0] : vector<8x128xf32> to vector<128xf32>
    %40 = vector.shape_cast %39 : vector<128xf32> to vector<1x128xf32>
    %cst_17 = arith.constant 1.250000e-01 : f32
    %41 = vector.broadcast %cst_17 : f32 to vector<1x128xf32>
    %42 = arith.mulf %37, %41 : vector<1x128xf32>
    %cst_18 = arith.constant 1.250000e-01 : f32
    %43 = vector.broadcast %cst_18 : f32 to vector<1x128xf32>
    %44 = arith.mulf %40, %43 : vector<1x128xf32>
    %45 = arith.mulf %42, %42 : vector<1x128xf32>
    %46 = arith.subf %44, %45 : vector<1x128xf32>
    %cst_19 = arith.constant 0.000000e+00 : f32
    %47 = vector.broadcast %cst_19 : f32 to vector<1x128xf32>
    %48 = arith.maximumf %46, %47 : vector<1x128xf32>
    %49 = vector.extract_strided_slice %0 {offsets = [2, 0], sizes = [1, 128], strides = [1, 1]} : vector<6x128xf32> to vector<1x128xf32>
    %50 = vector.extract_strided_slice %0 {offsets = [3, 0], sizes = [1, 128], strides = [1, 1]} : vector<6x128xf32> to vector<1x128xf32>
    %cst_20 = arith.constant 9.99999974E-6 : f32
    %51 = vector.broadcast %cst_20 : f32 to vector<1x128xf32>
    %52 = arith.addf %48, %51 : vector<1x128xf32>
    %53 = math.rsqrt %52 : vector<1x128xf32>
    %54 = arith.mulf %49, %53 : vector<1x128xf32>
    %55 = vector.broadcast %42 : vector<1x128xf32> to vector<8x128xf32>
    %56 = arith.subf %35, %55 : vector<8x128xf32>
    %57 = vector.broadcast %54 : vector<1x128xf32> to vector<8x128xf32>
    %58 = arith.mulf %56, %57 : vector<8x128xf32>
    %59 = vector.broadcast %50 : vector<1x128xf32> to vector<8x128xf32>
    %60 = arith.addf %58, %59 : vector<8x128xf32>
    %cst_21 = arith.constant 0.00999999977 : f32
    %61 = vector.broadcast %cst_21 : f32 to vector<8x128xf32>
    %62 = arith.mulf %61, %60 : vector<8x128xf32>
    %63 = arith.maximumf %60, %62 : vector<8x128xf32>
    %64 = arith.truncf %63 : vector<8x128xf32> to vector<8x128xbf16>
    %c0_22 = arith.constant 0 : index
    %c0_23 = arith.constant 0 : index
    %65 = vector.load %arg3[%c0_22, %c0_23] : memref<128x128xbf16, #tpu.memory_space<vmem>>, vector<128x128xbf16>
    %cst_24 = arith.constant dense<0.000000e+00> : vector<8x128xf32>
    %66 = tpu.matmul %64, %65, %cst_24 {dimension_numbers = #tpu.dot_dimension_numbers<[1], [0], [0], [1], [0, 0, 1, 1], [], []>} : vector<8x128xbf16>, vector<128x128xbf16>, vector<8x128xf32> -> vector<8x128xf32>
    %cst_25 = arith.constant dense<0.000000e+00> : vector<128xf32>
    %67 = vector.multi_reduction <add>, %66, %cst_25 [0] : vector<8x128xf32> to vector<128xf32>
    %68 = vector.shape_cast %67 : vector<128xf32> to vector<1x128xf32>
    %69 = arith.mulf %66, %66 : vector<8x128xf32>
    %cst_26 = arith.constant dense<0.000000e+00> : vector<128xf32>
    %70 = vector.multi_reduction <add>, %69, %cst_26 [0] : vector<8x128xf32> to vector<128xf32>
    %71 = vector.shape_cast %70 : vector<128xf32> to vector<1x128xf32>
    %cst_27 = arith.constant 1.250000e-01 : f32
    %72 = vector.broadcast %cst_27 : f32 to vector<1x128xf32>
    %73 = arith.mulf %68, %72 : vector<1x128xf32>
    %cst_28 = arith.constant 1.250000e-01 : f32
    %74 = vector.broadcast %cst_28 : f32 to vector<1x128xf32>
    %75 = arith.mulf %71, %74 : vector<1x128xf32>
    %76 = arith.mulf %73, %73 : vector<1x128xf32>
    %77 = arith.subf %75, %76 : vector<1x128xf32>
    %cst_29 = arith.constant 0.000000e+00 : f32
    %78 = vector.broadcast %cst_29 : f32 to vector<1x128xf32>
    %79 = arith.maximumf %77, %78 : vector<1x128xf32>
    %80 = vector.extract_strided_slice %0 {offsets = [4, 0], sizes = [1, 128], strides = [1, 1]} : vector<6x128xf32> to vector<1x128xf32>
    %81 = vector.extract_strided_slice %0 {offsets = [5, 0], sizes = [1, 128], strides = [1, 1]} : vector<6x128xf32> to vector<1x128xf32>
    %cst_30 = arith.constant 9.99999974E-6 : f32
    %82 = vector.broadcast %cst_30 : f32 to vector<1x128xf32>
    %83 = arith.addf %79, %82 : vector<1x128xf32>
    %84 = math.rsqrt %83 : vector<1x128xf32>
    %85 = arith.mulf %80, %84 : vector<1x128xf32>
    %86 = vector.broadcast %73 : vector<1x128xf32> to vector<8x128xf32>
    %87 = arith.subf %66, %86 : vector<8x128xf32>
    %88 = vector.broadcast %85 : vector<1x128xf32> to vector<8x128xf32>
    %89 = arith.mulf %87, %88 : vector<8x128xf32>
    %90 = vector.broadcast %81 : vector<1x128xf32> to vector<8x128xf32>
    %91 = arith.addf %89, %90 : vector<8x128xf32>
    %92 = math.tanh %91 : vector<8x128xf32>
    %c0_31 = arith.constant 0 : index
    %c0_32 = arith.constant 0 : index
    %93 = vector.load %arg5[%c0_31, %c0_32] : memref<8x128xf32, #tpu.memory_space<vmem>>, vector<8x128xf32>
    tpu.vector_store %arg5[%c0_31, %c0_32], %92 {strides = array<i32>} : memref<8x128xf32, #tpu.memory_space<vmem>>, vector<8x128xf32>,
    return
  }
}

</mosaic_0001>

<bundles_post_ra>
// kernel: tpu_custom_call.1
= control target key start
LH: loop header
LB: loop body
LE: loop exit
PB: predicated region body
PF: predicated region fallthrough
CT: control target
= control target key end

     0   :  { %10 = vsyncpa [#allocation3], 0  ;;  %s1646_s0 = inlined_call_operand.hbm [shape: f32[8,1024], index: 0, kind: input, shape index: {}]   ;;  %s1647_s1 = inlined_call_operand.hbm [shape: bf16[1024,128], index: 1, kind: input, shape index: {}]   ;;  %s1648_s2 = inlined_call_operand.hbm [shape: bf16[128,128], index: 2, kind: input, shape index: {}]   ;;  %s1649_s3 = inlined_call_operand.hbm [shape: bf16[128,128], index: 3, kind: input, shape index: {}]   ;;  %s1650_s4 = inlined_call_operand.hbm [shape: f32[6,128], index: 4, kind: input, shape index: {}]   ;;  %s1651_s5 = inlined_call_operand.hbm [shape: f32[8,128], index: 5, kind: output, shape index: {}]  }
   0x1   :  { %11 = vsyncpa [#allocation6], 0 }
   0x2   :  { %12 = vsyncpa [#allocation9], 0  ;;  %s29_s20 = sshll.u32 %s1647_s1, 4  ;;  %s30_s20 = int_to_ptr.hbm [resolvable:$true] %s29_s20 }
   0x3   :  { %13 = vsyncpa [#allocation4], 0  ;;  %s1582_s21 = smov [#allocation5]   ;;  %s55_s25 = sshll.u32 %s1649_s3, 4  ;;  %s56_s25 = int_to_ptr.hbm [resolvable:$true] %s55_s25 }
   0x4   :  { %s31_s22 = sshll.u32 %s1582_s21, 4  ;;  %s1583_s26 = smov 64   ;;  %s32_s22 = int_to_ptr.vmem [resolvable:$true] %s31_s22 }
   0x5   :  { %s1584_s27 = smov 4   ;;  %s1585_s28 = smov [#allocation8]  }
   0x6   :  { %37 = dma.hbm_to_vmem [thread:$0]  %s30_s20, 8192, %s32_s22, [#allocation6], %s1583_s26, %s1583_s26, %s1584_s27  }
   0x7   :  { %s57_s29 = sshll.u32 %s1585_s28, 4  ;;  %s19_s7 = sshll.u32 %s1646_s0, 4  ;;  %s58_s29 = int_to_ptr.vmem [resolvable:$true] %s57_s29  ;;  %s20_s7 = int_to_ptr.hbm [resolvable:$true] %s19_s7 }
   0x8   :  { %63 = dma.hbm_to_vmem [thread:$0]  %s56_s25, 1024, %s58_s29, [#allocation9], %s1583_s26, %s1583_s26, %s1584_s27  }
   0x9   :  { %s42_s9 = sshll.u32 %s1648_s2, 4  ;;  %s1586_s10 = smov [#allocation2]   ;;  %s43_s9 = int_to_ptr.hbm [resolvable:$true] %s42_s9 }
   0xa   :  { %s21_s11 = sshll.u32 %s1586_s10, 4  ;;  %s1587_s3 = smov [#allocation7]   ;;  %s22_s11 = int_to_ptr.vmem [resolvable:$true] %s21_s11 }
   0xb   :  { %24 = dma.hbm_to_vmem [thread:$0]  %s20_s7, 1024, %s22_s11, [#allocation3]  }
   0xc   :  { %s44_s12 = sshll.u32 %s1587_s3, 4  ;;  %s69_s15 = sshll.u32 %s1650_s4, 4  ;;  %s45_s12 = int_to_ptr.vmem [resolvable:$true] %s44_s12  ;;  %s70_s15 = int_to_ptr.hbm [resolvable:$true] %s69_s15 }
   0xd   :  { %50 = dma.hbm_to_vmem [thread:$0]  %s43_s9, 1024, %s45_s12, [#allocation6], %s1583_s26, %s1583_s26, %s1584_s27  }
   0xe   :  { %s1588_s0 = smov [#allocation10]  }
   0xf   :  { %s71_s16 = sshll.u32 %s1588_s0, 4  ;;  %s72_s16 = int_to_ptr.vmem [resolvable:$true] %s71_s16 }
  0x10   :  { %74 = dma.hbm_to_vmem [thread:$0]  %s70_s15, 128, %s72_s16, [#allocation9]  }
  0x11   :  { %1574 = dma.done.wait [#allocation3], 1024  }
  0x12   :  { %1575 = vsyncadd [#allocation3], 4294966272 }
  0x13   :  { %1576 = dma.done.wait [#allocation6], 9216  }
  0x14   :  { %1577 = vsyncadd [#allocation6], 4294958080 }
  0x15   :  { %1578 = dma.done.wait [#allocation9], 1152  }
  0x16   :  { %1579 = vsyncadd [#allocation9], 4294966144  ;;  %v1341_v0 = vld [vmem:[#allocation5 + $0x38] sm:$0xff]  ;;  %v1340_v4 = vld [vmem:[#allocation5 + $0x30] sm:$0xff]  ;;  %s1589_s2 = smov [#allocation11]   ;;  %s1002_s19 = sshll.u32 %s1651_s5, 4  ;;  %s1003_s19 = int_to_ptr.hbm [resolvable:$true] %s1002_s19 }
  0x17   :  { %v1349_v1 = vld [vmem:[#allocation5 + $0x78] sm:$0xff]  ;;  %624 = vmatpush.bf16.msra.mxu0 %v1341_v0  ;;  %v1348_v5 = vld [vmem:[#allocation5 + $0x70] sm:$0xff]  ;;  %v1339_v8 = vld [vmem:[#allocation5 + $0x28] sm:$0xff]  ;;  %s1000_s4 = sshll.u32 %s1589_s2, 4  ;;  %s1001_s4 = int_to_ptr.vmem [resolvable:$true] %s1000_s4 }
  0x18   :  { %v1357_v2 = vld [vmem:[#allocation5 + $0xb8] sm:$0xff]  ;;  %637 = vmatpush.bf16.msra.mxu1 %v1349_v1  ;;  %v1356_v6 = vld [vmem:[#allocation5 + $0xb0] sm:$0xff]  ;;  %v1347_v9 = vld [vmem:[#allocation5 + $0x68] sm:$0xff] }
  0x19   :  { %v1365_v3 = vld [vmem:[#allocation5 + $0xf8] sm:$0xff]  ;;  %650 = vmatpush.bf16.msra.mxu2 %v1357_v2  ;;  %v1364_v7 = vld [vmem:[#allocation5 + $0xf0] sm:$0xff]  ;;  %v1355_v10 = vld [vmem:[#allocation5 + $0xa8] sm:$0xff] }
  0x1a   :  { %663 = vmatpush.bf16.msra.mxu3 %v1365_v3  ;;  %v1363_v11 = vld [vmem:[#allocation5 + $0xe8] sm:$0xff]  ;;  %v1338_v12 = vld [vmem:[#allocation5 + $0x20] sm:$0xff]  ;;  %v1337_v16 = vld [vmem:[#allocation5 + $0x18] sm:$0xff] }
  0x1b   :  { %625 = vmatpush.bf16.msra.mxu0 %v1340_v4  ;;  %v1346_v13 = vld [vmem:[#allocation5 + $0x60] sm:$0xff]  ;;  %v1345_v17 = vld [vmem:[#allocation5 + $0x58] sm:$0xff]  ;;  %v1336_v20 = vld [vmem:[#allocation5 + $0x10] sm:$0xff] }
  0x1c   :  { %638 = vmatpush.bf16.msra.mxu1 %v1348_v5  ;;  %v1354_v14 = vld [vmem:[#allocation5 + $0xa0] sm:$0xff]  ;;  %v1353_v18 = vld [vmem:[#allocation5 + $0x98] sm:$0xff]  ;;  %v1344_v21 = vld [vmem:[#allocation5 + $0x50] sm:$0xff] }
  0x1d   :  { %651 = vmatpush.bf16.msra.mxu2 %v1356_v6  ;;  %v1362_v15 = vld [vmem:[#allocation5 + $0xe0] sm:$0xff]  ;;  %v1361_v19 = vld [vmem:[#allocation5 + $0xd8] sm:$0xff]  ;;  %v1352_v22 = vld [vmem:[#allocation5 + $0x90] sm:$0xff] }
  0x1e   :  { %664 = vmatpush.bf16.msra.mxu3 %v1364_v7  ;;  %v1360_v23 = vld [vmem:[#allocation5 + $0xd0] sm:$0xff]  ;;  %v1335_v24 = vld [vmem:[#allocation5 + $0x8] sm:$0xff]  ;;  %v1334_v28 = vld [vmem:[#allocation5] sm:$0xff] }
  0x1f   :  { %626 = vmatpush.bf16.msra.mxu0 %v1339_v8  ;;  %v1343_v25 = vld [vmem:[#allocation5 + $0x48] sm:$0xff]  ;;  %v1342_v29 = vld [vmem:[#allocation5 + $0x40] sm:$0xff]  ;;  %v1373_v32 = vld [vmem:[#allocation5 + $0x138] sm:$0xff] }
  0x20   :  { %639 = vmatpush.bf16.msra.mxu1 %v1347_v9  ;;  %v1351_v26 = vld [vmem:[#allocation5 + $0x88] sm:$0xff]  ;;  %v1350_v30 = vld [vmem:[#allocation5 + $0x80] sm:$0xff]  ;;  %v98_v33 = vld [vmem:[#allocation2 + $0x10] sm:$0xff] }
  0x21   :  { %652 = vmatpush.bf16.msra.mxu2 %v1355_v10  ;;  %v1359_v27 = vld [vmem:[#allocation5 + $0xc8] sm:$0xff]  ;;  %v1358_v31 = vld [vmem:[#allocation5 + $0xc0] sm:$0xff]  ;;  %v1381_v35 = vld [vmem:[#allocation5 + $0x178] sm:$0xff]  ;;  %v106_v40 = vpack.c.bf16 %v98_v33, %v98_v33 }
  0x22   :  { %665 = vmatpush.bf16.msra.mxu3 %v1363_v11  ;;  %v96_v34 = vld [vmem:[#allocation2] sm:$0xff]  ;;  %v99_v36 = vld [vmem:[#allocation2 + $0x18] sm:$0xff]  ;;  %v97_v37 = vld [vmem:[#allocation2 + $0x8] sm:$0xff] }
  0x23   :  { %627 = vmatpush.bf16.msra.mxu0 %v1338_v12  ;;  %v1389_v38 = vld [vmem:[#allocation5 + $0x1b8] sm:$0xff]  ;;  %v104_v41 = vpack.c.bf16 %v96_v34, %v96_v34  ;;  %v107_v42 = vpack.c.bf16 %v99_v36, %v99_v36  ;;  %v105_v43 = vpack.c.bf16 %v97_v37, %v97_v37  ;;  %v1372_v44 = vld [vmem:[#allocation5 + $0x130] sm:$0xff]  ;;  %v1371_v48 = vld [vmem:[#allocation5 + $0x128] sm:$0xff] }
  0x24   :  { %640 = vmatpush.bf16.msra.mxu1 %v1346_v13  ;;  %v1397_v39 = vld [vmem:[#allocation5 + $0x1f8] sm:$0xff]  ;;  %v1380_v45 = vld [vmem:[#allocation5 + $0x170] sm:$0xff]  ;;  %v1379_v49 = vld [vmem:[#allocation5 + $0x168] sm:$0xff] }
  0x25   :  { %653 = vmatpush.bf16.msra.mxu2 %v1354_v14  ;;  %v1388_v46 = vld [vmem:[#allocation5 + $0x1b0] sm:$0xff]  ;;  %v1387_v50 = vld [vmem:[#allocation5 + $0x1a8] sm:$0xff]  ;;  %v1370_v52 = vld [vmem:[#allocation5 + $0x120] sm:$0xff] }
  0x26   :  { %666 = vmatpush.bf16.msra.mxu3 %v1362_v15  ;;  %v1396_v47 = vld [vmem:[#allocation5 + $0x1f0] sm:$0xff]  ;;  %v1395_v51 = vld [vmem:[#allocation5 + $0x1e8] sm:$0xff]  ;;  %v1378_v53 = vld [vmem:[#allocation5 + $0x160] sm:$0xff] }
  0x27   :  { %628 = vmatpush.bf16.msra.mxu0 %v1337_v16  ;;  %v1386_v54 = vld [vmem:[#allocation5 + $0x1a0] sm:$0xff]  ;;  %v1369_v56 = vld [vmem:[#allocation5 + $0x118] sm:$0xff]  ;;  %v1368_v60 = vld [vmem:[#allocation5 + $0x110] sm:$0xff] }
  0x28   :  { %641 = vmatpush.bf16.msra.mxu1 %v1345_v17  ;;  %v1394_v55 = vld [vmem:[#allocation5 + $0x1e0] sm:$0xff]  ;;  %v1377_v57 = vld [vmem:[#allocation5 + $0x158] sm:$0xff]  ;;  %v1376_v61 = vld [vmem:[#allocation5 + $0x150] sm:$0xff] }
  0x29   :  { %654 = vmatpush.bf16.msra.mxu2 %v1353_v18  ;;  %v1385_v58 = vld [vmem:[#allocation5 + $0x198] sm:$0xff]  ;;  %v1384_v62 = vld [vmem:[#allocation5 + $0x190] sm:$0xff]  ;;  %v1367_v0 = vld [vmem:[#allocation5 + $0x108] sm:$0xff] }
  0x2a   :  { %667 = vmatpush.bf16.msra.mxu3 %v1361_v19  ;;  %v1393_v59 = vld [vmem:[#allocation5 + $0x1d8] sm:$0xff]  ;;  %v1392_v63 = vld [vmem:[#allocation5 + $0x1d0] sm:$0xff]  ;;  %v1375_v1 = vld [vmem:[#allocation5 + $0x148] sm:$0xff] }
  0x2b   :  { %629 = vmatpush.bf16.msra.mxu0 %v1336_v20  ;;  %v1383_v2 = vld [vmem:[#allocation5 + $0x188] sm:$0xff]  ;;  %v1366_v4 = vld [vmem:[#allocation5 + $0x100] sm:$0xff]  ;;  %v102_v10 = vld [vmem:[#allocation2 + $0x30] sm:$0xff] }
  0x2c   :  { %642 = vmatpush.bf16.msra.mxu1 %v1344_v21  ;;  %v1391_v3 = vld [vmem:[#allocation5 + $0x1c8] sm:$0xff]  ;;  %v1374_v5 = vld [vmem:[#allocation5 + $0x140] sm:$0xff]  ;;  %v103_v11 = vld [vmem:[#allocation2 + $0x38] sm:$0xff]  ;;  %v110_v14 = vpack.c.bf16 %v102_v10, %v102_v10 }
  0x2d   :  { %655 = vmatpush.bf16.msra.mxu2 %v1352_v22  ;;  %v1382_v6 = vld [vmem:[#allocation5 + $0x180] sm:$0xff]  ;;  %v101_v8 = vld [vmem:[#allocation2 + $0x28] sm:$0xff]  ;;  %v111_v15 = vpack.c.bf16 %v103_v11, %v103_v11 }
  0x2e   :  { %668 = vmatpush.bf16.msra.mxu3 %v1360_v23  ;;  %v100_v7 = vld [vmem:[#allocation2 + $0x20] sm:$0xff]  ;;  %v109_v13 = vpack.c.bf16 %v101_v8, %v101_v8 }
  0x2f   :  { %630 = vmatpush.bf16.msra.mxu0 %v1335_v24  ;;  %v1390_v9 = vld [vmem:[#allocation5 + $0x1c0] sm:$0xff]  ;;  %v108_v12 = vpack.c.bf16 %v100_v7, %v100_v7 }
  0x30   :  { %643 = vmatpush.bf16.msra.mxu1 %v1343_v25  ;;  %v1635_v7 = vld [vmem:[#allocation10] sm:$0x3f] }
  0x31   :  { %656 = vmatpush.bf16.msra.mxu2 %v1351_v26 }
  0x32   :  { %669 = vmatpush.bf16.msra.mxu3 %v1359_v27 }
  0x33   :  { %631 = vmatpush.bf16.msra.mxu0 %v1334_v28 }
  0x34   :  { %644 = vmatpush.bf16.msra.mxu1 %v1342_v29  ;;  %v1405_v29 = vld [vmem:[#allocation7 + $0x38] sm:$0xff] }
  0x35   :  { %657 = vmatpush.bf16.msra.mxu2 %v1350_v30 }
  0x36   :  { %670 = vmatpush.bf16.msra.mxu3 %v1358_v31  ;;  %632 = vmatmul.bf16.vlgmr.msra.gmra.mxu0 %v104_v41  ;;  %v1404_v31 = vld [vmem:[#allocation7 + $0x30] sm:$0xff] }
  0x37   :  { %676 = vmatpush.bf16.msrb.mxu0 %v1373_v32  ;;  %645 = vmatmul.bf16.vlgmr.msra.gmra.mxu1 %v105_v43 }
  0x38   :  { %689 = vmatpush.bf16.msrb.mxu1 %v1381_v35  ;;  %658 = vmatmul.bf16.vlgmr.msra.gmra.mxu2 %v106_v40 }
  0x39   :  { %702 = vmatpush.bf16.msrb.mxu2 %v1389_v38  ;;  %671 = vmatmul.bf16.vlgmr.msra.gmra.mxu3 %v107_v42  ;;  %v1403_v38 = vld [vmem:[#allocation7 + $0x28] sm:$0xff]  ;;  %v1402_v42 = vld [vmem:[#allocation7 + $0x20] sm:$0xff] }
  0x3a   :  { %715 = vmatpush.bf16.msrb.mxu3 %v1397_v39 }
  0x3b   :  { %677 = vmatpush.bf16.msrb.mxu0 %v1372_v44 }
  0x3c   :  { %690 = vmatpush.bf16.msrb.mxu1 %v1380_v45 }
  0x3d   :  { %703 = vmatpush.bf16.msrb.mxu2 %v1388_v46 }
  0x3e   :  { %716 = vmatpush.bf16.msrb.mxu3 %v1396_v47 }
  0x3f   :  { %678 = vmatpush.bf16.msrb.mxu0 %v1371_v48 }
  0x40   :  { %691 = vmatpush.bf16.msrb.mxu1 %v1379_v49  ;;  %v1401_v49 = vld [vmem:[#allocation7 + $0x18] sm:$0xff] }
  0x41   :  { %704 = vmatpush.bf16.msrb.mxu2 %v1387_v50 }
  0x42   :  { %717 = vmatpush.bf16.msrb.mxu3 %v1395_v51 }
  0x43   :  { %679 = vmatpush.bf16.msrb.mxu0 %v1370_v52 }
  0x44   :  { %692 = vmatpush.bf16.msrb.mxu1 %v1378_v53 }
  0x45   :  { %705 = vmatpush.bf16.msrb.mxu2 %v1386_v54  ;;  %v1400_v54 = vld [vmem:[#allocation7 + $0x10] sm:$0xff] }
  0x46   :  { %718 = vmatpush.bf16.msrb.mxu3 %v1394_v55 }
  0x47   :  { %680 = vmatpush.bf16.msrb.mxu0 %v1369_v56 }
  0x48   :  { %693 = vmatpush.bf16.msrb.mxu1 %v1377_v57 }
  0x49   :  { %706 = vmatpush.bf16.msrb.mxu2 %v1385_v58 }
  0x4a   :  { %719 = vmatpush.bf16.msrb.mxu3 %v1393_v59  ;;  %v1399_v59 = vld [vmem:[#allocation7 + $0x8] sm:$0xff] }
  0x4b   :  { %681 = vmatpush.bf16.msrb.mxu0 %v1368_v60 }
  0x4c   :  { %694 = vmatpush.bf16.msrb.mxu1 %v1376_v61 }
  0x4d   :  { %707 = vmatpush.bf16.msrb.mxu2 %v1384_v62  ;;  %v1398_v62 = vld [vmem:[#allocation7] sm:$0xff] }
  0x4e   :  { %720 = vmatpush.bf16.msrb.mxu3 %v1392_v63 }
  0x4f   :  { %682 = vmatpush.bf16.msrb.mxu0 %v1367_v0 }
  0x50   :  { %695 = vmatpush.bf16.msrb.mxu1 %v1375_v1 }
  0x51   :  { %708 = vmatpush.bf16.msrb.mxu2 %v1383_v2 }
  0x52   :  { %721 = vmatpush.bf16.msrb.mxu3 %v1391_v3 }
  0x53   :  { %683 = vmatpush.bf16.msrb.mxu0 %v1366_v4 }
  0x54   :  { %696 = vmatpush.bf16.msrb.mxu1 %v1374_v5 }
  0x55   :  { %709 = vmatpush.bf16.msrb.mxu2 %v1382_v6 }
  0x56   :  { %722 = vmatpush.bf16.msrb.mxu3 %v1390_v9  ;;  %684 = vmatmul.bf16.vlgmr.msrb.gmra.mxu0 %v108_v12 }
  0x57   :  { %697 = vmatmul.bf16.vlgmr.msrb.gmra.mxu1 %v109_v13  ;;  %830 = vmatpush.bf16.msra.mxu0 %v1405_v29  ;;  %v761_v13 = vperm.slane %v1635_v7, 1 }
  0x58   :  { %710 = vmatmul.bf16.vlgmr.msrb.gmra.mxu2 %v110_v14 }
  0x59   :  { %723 = vmatmul.bf16.vlgmr.msrb.gmra.mxu3 %v111_v15 }
  0x5b   :  { %831 = vmatpush.bf16.msra.mxu0 %v1404_v31 }
  0x5f   :  { %832 = vmatpush.bf16.msra.mxu0 %v1403_v38 }
  0x63   :  { %833 = vmatpush.bf16.msra.mxu0 %v1402_v42 }
  0x67   :  { %834 = vmatpush.bf16.msra.mxu0 %v1401_v49 }
  0x6b   :  { %835 = vmatpush.bf16.msra.mxu0 %v1400_v54 }
  0x6f   :  { %836 = vmatpush.bf16.msra.mxu0 %v1399_v59 }
  0x73   :  { %837 = vmatpush.bf16.msra.mxu0 %v1398_v62 }
  0xb3   :  { %v633_v16 = vpop.f32.mrf.mxu0 }
  0xb4   :  { %v646_v17 = vpop.f32.mrf.mxu1 }
  0xb5   :  { %v647_v24 = vadd.f32 %v646_v17, %v633_v16 }
  0xbb   :  { %v659_v18 = vpop.f32.mrf.mxu2  ;;  %v635_v20 = vpop.f32.mrf.mxu0 }
  0xbc   :  { %v672_v19 = vpop.f32.mrf.mxu3  ;;  %v648_v21 = vpop.f32.mrf.mxu1  ;;  %v660_v25 = vadd.f32 %v659_v18, %v647_v24  ;;  %v1412_v20 = vld [vmem:[#allocation8 + $0x30] sm:$0xff] }
  0xbd   :  { %v1411_v21 = vld [vmem:[#allocation8 + $0x28] sm:$0xff] }
  0xbe   :  { %v673_v26 = vadd.f32 %v672_v19, %v660_v25  ;;  %v1413_v19 = vld [vmem:[#allocation8 + $0x38] sm:$0xff]  ;;  %v1410_v25 = vld [vmem:[#allocation8 + $0x20] sm:$0xff] }
  0xbf   :  { %945 = vmatpush.bf16.msra.mxu1 %v1413_v19 }
  0xc3   :  { %v661_v22 = vpop.f32.mrf.mxu2  ;;  %946 = vmatpush.bf16.msra.mxu1 %v1412_v20 }
  0xc4   :  { %v674_v23 = vpop.f32.mrf.mxu3 }
  0xc7   :  { %947 = vmatpush.bf16.msra.mxu1 %v1411_v21 }
  0xcb   :  { %948 = vmatpush.bf16.msra.mxu1 %v1410_v25 }
  0xd3   :  { %v685_v27 = vpop.f32.mrf.mxu0 }
  0xd4   :  { %v698_v28 = vpop.f32.mrf.mxu1  ;;  %v686_v30 = vadd.f32 %v685_v27, %v673_v26 }
  0xd6   :  { %v699_v32 = vadd.f32 %v698_v28, %v686_v30  ;;  %v1409_v30 = vld [vmem:[#allocation8 + $0x18] sm:$0xff] }
  0xd7   :  { %949 = vmatpush.bf16.msra.mxu1 %v1409_v30 }
  0xdb   :  { %v711_v33 = vpop.f32.mrf.mxu2  ;;  %v687_v36 = vpop.f32.mrf.mxu0 }
  0xdc   :  { %v724_v34 = vpop.f32.mrf.mxu3  ;;  %v712_v35 = vadd.f32 %v711_v33, %v699_v32  ;;  %v700_v37 = vpop.f32.mrf.mxu1  ;;  %v1408_v36 = vld [vmem:[#allocation8 + $0x10] sm:$0xff] }
  0xdd   :  { %950 = vmatpush.bf16.msra.mxu1 %v1408_v36 }
  0xde   :  { %v725_v39 = vadd.f32 %v724_v34, %v712_v35 }
  0xe0   :  { %v728_v40 = vrot.slane %v725_v39, 4  ;;  %v734_v41 = vmul.f32 %v725_v39, %v725_v39 }
  0xe2   :  { %v729_v43 = vadd.f32 %v728_v40, %v725_v39  ;;  %v735_v44 = vrot.slane %v734_v41, 4 }
  0xe3   :  { %v713_v45 = vpop.f32.mrf.mxu2 }
  0xe4   :  { %v726_v46 = vpop.f32.mrf.mxu3  ;;  %v730_v47 = vrot.slane %v729_v43, 2  ;;  %v736_v48 = vadd.f32 %v735_v44, %v734_v41  ;;  %v1407_v41 = vld [vmem:[#allocation8 + $0x8] sm:$0xff]  ;;  %v1406_v44 = vld [vmem:[#allocation8] sm:$0xff] }
  0xe5   :  { %951 = vmatpush.bf16.msra.mxu1 %v1407_v41 }
  0xe6   :  { %v731_v50 = vadd.f32 %v730_v47, %v729_v43  ;;  %v737_v51 = vrot.slane %v736_v48, 2 }
  0xe8   :  { %v732_v52 = vrot.slane %v731_v50, 1  ;;  %v738_v53 = vadd.f32 %v737_v51, %v736_v48 }
  0xe9   :  { %952 = vmatpush.bf16.msra.mxu1 %v1406_v44 }
  0xea   :  { %v733_v55 = vadd.f32 %v732_v52, %v731_v50  ;;  %v739_v56 = vrot.slane %v738_v53, 1 }
  0xec   :  { %v740_v57 = vadd.f32 %v739_v56, %v738_v53  ;;  %v741_v58 = vmul.f32 0.125, %v733_v55 }
  0xee   :  { %v742_v60 = vmul.f32 0.125, %v740_v57  ;;  %v743_v61 = vmul.f32 %v741_v58, %v741_v58  ;;  %v758_v11 = vsub.f32 %v725_v39, %v741_v58  ;;  %v876_v58 = vperm.slane %v1635_v7, 3 }
  0xf0   :  { %v744_v63 = vsub.f32 %v742_v60, %v743_v61 }
  0xf2   :  { %v745_v0 = vmax.f32 %v744_v63, 0.0 }
  0xf4   :  { %v746_v1 = vadd.f32 1e-05, %v745_v0 }
  0xf6   :  { %1422 = vrsqrt.f32 %v746_v1  ;;  %vm753_vm1 = vweird.f32 %v746_v1 }
  0xfc   :  { %v1423_v2 = vpop.eup %1422 }
  0xfd   :  { %v748_v3 = vmul.f32 %v1423_v2, %v746_v1  ;;  %vm754_vm0 = vweird.f32 %v1423_v2 }
  0xfe   :  { %vm755_vm2 = vmor %vm753_vm1, %vm754_vm0 }
  0xff   :  { %v749_v4 = vmul.f32 %v1423_v2, %v748_v3 }
 0x101   :  { %v750_v5 = vmul.f32 0.5, %v749_v4 }
 0x103   :  { %v751_v6 = vsub.f32 1.5, %v750_v5 }
 0x105   :  { %v752_v8 = vmul.f32 %v1423_v2, %v751_v6 }
 0x107   :  { %v756_v9 = vsel %vm755_vm2, %v1423_v2, %v752_v8 }
 0x108   :  { %v757_v10 = vmul.f32 %v756_v9, %v1635_v7 }
 0x10a   :  { %v759_v12 = vperm.slane %v757_v10, 0 }
 0x10c   :  { %v760_v14 = vmul.f32 %v759_v12, %v758_v11 }
 0x10e   :  { %v762_v15 = vadd.f32 %v761_v13, %v760_v14 }
 0x110   :  { %v763_v16 = vmul.f32 0.01, %v762_v15 }
 0x112   :  { %v764_v17 = vmax.f32 %v762_v15, %v763_v16 }
 0x114   :  { %v765_v18 = vpack.c.bf16 %v764_v17, %v764_v17 }
 0x116   :  { %838 = vmatmul.bf16.vlgmr.msra.gmra.mxu0 %v765_v18 }
 0x193   :  { %v839_v22 = vpop.f32.mrf.mxu0 }
 0x194   :  { %v843_v23 = vrot.slane %v839_v22, 4  ;;  %v849_v24 = vmul.f32 %v839_v22, %v839_v22 }
 0x196   :  { %v844_v26 = vadd.f32 %v843_v23, %v839_v22  ;;  %v850_v27 = vrot.slane %v849_v24, 4 }
 0x198   :  { %v845_v28 = vrot.slane %v844_v26, 2  ;;  %v851_v29 = vadd.f32 %v850_v27, %v849_v24 }
 0x19a   :  { %v846_v31 = vadd.f32 %v845_v28, %v844_v26  ;;  %v852_v32 = vrot.slane %v851_v29, 2 }
 0x19b   :  { %v841_v33 = vpop.f32.mrf.mxu0 }
 0x19c   :  { %v847_v34 = vrot.slane %v846_v31, 1  ;;  %v853_v35 = vadd.f32 %v852_v32, %v851_v29  ;;  %v991_v32 = vperm.slane %v1635_v7, 5 }
 0x19e   :  { %v848_v37 = vadd.f32 %v847_v34, %v846_v31  ;;  %v854_v38 = vrot.slane %v853_v35, 1 }
 0x1a0   :  { %v855_v39 = vadd.f32 %v854_v38, %v853_v35  ;;  %v856_v40 = vmul.f32 0.125, %v848_v37 }
 0x1a2   :  { %v857_v42 = vmul.f32 0.125, %v855_v39  ;;  %v858_v43 = vmul.f32 %v856_v40, %v856_v40  ;;  %v873_v56 = vsub.f32 %v839_v22, %v856_v40 }
 0x1a4   :  { %v859_v45 = vsub.f32 %v857_v42, %v858_v43 }
 0x1a6   :  { %v860_v46 = vmax.f32 %v859_v45, 0.0 }
 0x1a8   :  { %v861_v47 = vadd.f32 1e-05, %v860_v46 }
 0x1aa   :  { %1424 = vrsqrt.f32 %v861_v47  ;;  %vm868_vm4 = vweird.f32 %v861_v47 }
 0x1b0   :  { %v1425_v48 = vpop.eup %1424 }
 0x1b1   :  { %v863_v49 = vmul.f32 %v1425_v48, %v861_v47  ;;  %vm869_vm3 = vweird.f32 %v1425_v48 }
 0x1b2   :  { %vm870_vm5 = vmor %vm868_vm4, %vm869_vm3 }
 0x1b3   :  { %v864_v50 = vmul.f32 %v1425_v48, %v863_v49 }
 0x1b5   :  { %v865_v51 = vmul.f32 0.5, %v864_v50 }
 0x1b7   :  { %v866_v52 = vsub.f32 1.5, %v865_v51 }
 0x1b9   :  { %v867_v53 = vmul.f32 %v1425_v48, %v866_v52 }
 0x1bb   :  { %v871_v54 = vsel %vm870_vm5, %v1425_v48, %v867_v53 }
 0x1bc   :  { %v872_v55 = vmul.f32 %v871_v54, %v1635_v7 }
 0x1be   :  { %v874_v57 = vperm.slane %v872_v55, 2 }
 0x1c0   :  { %v875_v59 = vmul.f32 %v874_v57, %v873_v56 }
 0x1c2   :  { %v877_v60 = vadd.f32 %v876_v58, %v875_v59 }
 0x1c4   :  { %v878_v61 = vmul.f32 0.01, %v877_v60 }
 0x1c6   :  { %v879_v62 = vmax.f32 %v877_v60, %v878_v61 }
 0x1c8   :  { %v880_v63 = vpack.c.bf16 %v879_v62, %v879_v62 }
 0x1ca   :  { %953 = vmatmul.bf16.vlgmr.msra.gmra.mxu1 %v880_v63 }
 0x247   :  { %v954_v0 = vpop.f32.mrf.mxu1 }
 0x248   :  { %v958_v1 = vrot.slane %v954_v0, 4  ;;  %v964_v2 = vmul.f32 %v954_v0, %v954_v0 }
 0x24a   :  { %v959_v3 = vadd.f32 %v958_v1, %v954_v0  ;;  %v965_v4 = vrot.slane %v964_v2, 4 }
 0x24c   :  { %v960_v5 = vrot.slane %v959_v3, 2  ;;  %v966_v6 = vadd.f32 %v965_v4, %v964_v2 }
 0x24e   :  { %v961_v8 = vadd.f32 %v960_v5, %v959_v3  ;;  %v967_v9 = vrot.slane %v966_v6, 2 }
 0x24f   :  { %v956_v10 = vpop.f32.mrf.mxu1 }
 0x250   :  { %v962_v11 = vrot.slane %v961_v8, 1  ;;  %v968_v12 = vadd.f32 %v967_v9, %v966_v6 }
 0x252   :  { %v963_v13 = vadd.f32 %v962_v11, %v961_v8  ;;  %v969_v14 = vrot.slane %v968_v12, 1 }
 0x254   :  { %v970_v15 = vadd.f32 %v969_v14, %v968_v12  ;;  %v971_v16 = vmul.f32 0.125, %v963_v13 }
 0x256   :  { %v972_v17 = vmul.f32 0.125, %v970_v15  ;;  %v973_v18 = vmul.f32 %v971_v16, %v971_v16  ;;  %v988_v30 = vsub.f32 %v954_v0, %v971_v16 }
 0x258   :  { %v974_v19 = vsub.f32 %v972_v17, %v973_v18 }
 0x25a   :  { %v975_v20 = vmax.f32 %v974_v19, 0.0 }
 0x25c   :  { %v976_v21 = vadd.f32 1e-05, %v975_v20 }
 0x25e   :  { %1426 = vrsqrt.f32 %v976_v21  ;;  %vm983_vm7 = vweird.f32 %v976_v21 }
 0x264   :  { %v1427_v22 = vpop.eup %1426 }
 0x265   :  { %v978_v23 = vmul.f32 %v1427_v22, %v976_v21  ;;  %vm984_vm6 = vweird.f32 %v1427_v22 }
 0x266   :  { %vm985_vm8 = vmor %vm983_vm7, %vm984_vm6 }
 0x267   :  { %v979_v24 = vmul.f32 %v1427_v22, %v978_v23 }
 0x269   :  { %v980_v25 = vmul.f32 0.5, %v979_v24 }
 0x26b   :  { %v981_v26 = vsub.f32 1.5, %v980_v25 }
 0x26d   :  { %v982_v27 = vmul.f32 %v1427_v22, %v981_v26 }
 0x26f   :  { %v986_v28 = vsel %vm985_vm8, %v1427_v22, %v982_v27 }
 0x270   :  { %v987_v29 = vmul.f32 %v986_v28, %v1635_v7 }
 0x272   :  { %v989_v31 = vperm.slane %v987_v29, 4 }
 0x274   :  { %v990_v33 = vmul.f32 %v989_v31, %v988_v30 }
 0x276   :  { %v992_v34 = vadd.f32 %v991_v32, %v990_v33 }
 0x278   :  { %1428 = vtanh.f32 %v992_v34 }
 0x27e   :  { %v1429_v35 = vpop.eup %1428 }
 0x27f   :  { %994 = vst [vmem:[#allocation11] sm:$0xff] %v1429_v35 }
 0x280   :  { %1005 = dma.vmem_to_hbm [thread:$0]  %s1001_s4, 128, %s1003_s19, [#allocation4]  }
 0x281   :  { %1580 = dma.done.wait [#allocation4], 128  }
 0x282   :  { %1581 = vsyncadd [#allocation4], 4294967168 }
 0x283   :  { %1010 = vsyncpa [#allocation3], 1 }
 0x284   :  { %1011 = vsyncpa [#allocation6], 1 }
 0x285   :  { %1012 = vsyncpa [#allocation9], 1 }
 0x286   :  { %1013 = vsyncpa [#allocation4], 1 }

</bundles_post_ra>
